<compile_context>
chip_gen: v6e
topology: v6e:2x2x1
jax: 0.10.0
libtpu: 0.0.40
codegen_flags: <defaults>
</compile_context>

<pallas_src>
import functools

import jax
import jax.numpy as jnp
from jax.experimental import pallas as pl
from jax.experimental.pallas import tpu as pltpu


# ----------------------------------------------------------------------------
# Helpers
# ----------------------------------------------------------------------------
def _round_up(x, m):
    return ((x + m - 1) // m) * m


def _choose_tile(dim, preferred, align):
    """Largest useful tile <= ~preferred, aligned to `align`."""
    if dim <= preferred:
        return _round_up(dim, align)
    n_tiles = -(-dim // preferred)
    return _round_up(-(-dim // n_tiles), align)


def _pad2d(x, rows, cols, value=0):
    r, c = x.shape
    if r == rows and c == cols:
        return x
    return jnp.pad(x, ((0, rows - r), (0, cols - c)), constant_values=value)


# ----------------------------------------------------------------------------
# Dense (Linear [+ ReLU]) kernel
# ----------------------------------------------------------------------------
def _dense_kernel(x_ref, w_ref, b_ref, o_ref, acc_ref, *, apply_relu):
    k = pl.program_id(2)

    @pl.when(k == 0)
    def _():
        acc_ref[...] = jnp.zeros_like(acc_ref)

    acc_ref[...] += jnp.dot(
        x_ref[...], w_ref[...], preferred_element_type=jnp.float32
    )

    @pl.when(k == pl.num_programs(2) - 1)
    def _():
        y = acc_ref[...] + b_ref[...]          # bias once, in the epilogue
        if apply_relu:
            y = jnp.maximum(y, 0.0)
        o_ref[...] = y.astype(o_ref.dtype)


def dense(x, w, b, *, apply_relu, out_dtype,
          tm_pref=256, tn_pref=512, tk_pref=512):
    """y = relu?(x @ w + b) tiled over (M, N, K) with an f32 VMEM accumulator.

    `x` may already be zero-padded (extra rows/cols); the output is
    (M_pad, N_pad) with N padded to a multiple of 128.  Padded output columns
    are exactly relu?(0 + 0) = 0, so outputs can be chained between layers.
    """
    m_in, k_in = x.shape
    k_w, n = w.shape
    assert k_in >= k_w, "activation width must cover weight in_features"

    tm = _choose_tile(m_in, tm_pref, 8)
    tk = _choose_tile(k_in, tk_pref, 128)
    tn = _choose_tile(n, tn_pref, 128)
    m_pad = _round_up(m_in, tm)
    k_pad = _round_up(k_in, tk)
    n_pad = _round_up(n, tn)

    x_p = _pad2d(x.astype(jnp.bfloat16), m_pad, k_pad)
    w_p = _pad2d(w.astype(jnp.bfloat16), k_pad, n_pad)
    b_p = _pad2d(b.reshape(1, -1).astype(jnp.float32), 1, n_pad)

    grid = (m_pad // tm, n_pad // tn, k_pad // tk)
    kernel = functools.partial(_dense_kernel, apply_relu=apply_relu)
    out_bytes = jnp.dtype(out_dtype).itemsize
    cost = pl.CostEstimate(
        flops=2 * m_pad * k_pad * n_pad,
        transcendentals=0,
        bytes_accessed=(m_pad * k_pad * 2 + k_pad * n_pad * 2
                        + n_pad * 4 + m_pad * n_pad * out_bytes),
    )

    return pl.pallas_call(
        kernel,
        out_shape=jax.ShapeDtypeStruct((m_pad, n_pad), out_dtype),
        grid=grid,
        in_specs=[
            pl.BlockSpec((tm, tk), lambda i, j, k: (i, k)),
            pl.BlockSpec((tk, tn), lambda i, j, k: (k, j)),
            pl.BlockSpec((1, tn), lambda i, j, k: (0, j)),
        ],
        out_specs=pl.BlockSpec((tm, tn), lambda i, j, k: (i, j)),
        scratch_shapes=[pltpu.VMEM((tm, tn), jnp.float32)],
        compiler_params=pltpu.CompilerParams(
            dimension_semantics=("parallel", "parallel", "arbitrary"),
            vmem_limit_bytes=48 * 1024 * 1024,
        ),
        cost_estimate=cost,
    )(x_p, w_p, b_p)


# ----------------------------------------------------------------------------
# Cross-entropy kernel (online logsumexp, tiled over vocab)
# ----------------------------------------------------------------------------
def _ce_kernel(logits_ref, labels_ref, o_ref, m_sc, l_sc, a_sc, *, v_valid, tv):
    j = pl.program_id(1)

    @pl.when(j == 0)
    def _():
        m_sc[...] = jnp.full_like(m_sc, -jnp.inf)
        l_sc[...] = jnp.zeros_like(l_sc)
        a_sc[...] = jnp.zeros_like(a_sc)

    logits = logits_ref[...].astype(jnp.float32)                 # (tm, tv)
    cols = j * tv + jax.lax.broadcasted_iota(jnp.int32, logits.shape, 1)
    # Mask padded vocab columns (they hold 0 from the padded projection).
    logits = jnp.where(cols < v_valid, logits, -1e30)

    labels = labels_ref[...]                                      # (tm, 1)
    m_prev = m_sc[...]
    m_new = jnp.maximum(m_prev, jnp.max(logits, axis=-1, keepdims=True))
    alpha = jnp.exp(m_prev - m_new)
    l_sc[...] = alpha * l_sc[...] + jnp.sum(jnp.exp(logits - m_new),
                                            axis=-1, keepdims=True)
    a_sc[...] = a_sc[...] + jnp.sum(jnp.where(cols == labels, logits, 0.0),
                                    axis=-1, keepdims=True)
    m_sc[...] = m_new

    @pl.when(j == pl.num_programs(1) - 1)
    def _():
        o_ref[...] = (m_sc[...] + jnp.log(l_sc[...])) - a_sc[...]


def cross_entropy_per_row(logits_p, labels_p, *, v_valid,
                          tm_pref=256, tv_pref=512):
    """Per-row CE losses (M_pad, 1) from (possibly padded) f32 logits."""
    m_rows, v_cols = logits_p.shape
    tm = _choose_tile(m_rows, tm_pref, 8)
    tv = _choose_tile(v_cols, tv_pref, 128)
    m_pad = _round_up(m_rows, tm)
    v_pad = _round_up(v_cols, tv)

    logits_p = _pad2d(logits_p, m_pad, v_pad)
    lab = _pad2d(labels_p.reshape(-1, 1).astype(jnp.int32), m_pad, 1)

    grid = (m_pad // tm, v_pad // tv)
    kernel = functools.partial(_ce_kernel, v_valid=v_valid, tv=tv)
    cost = pl.CostEstimate(
        flops=5 * m_pad * v_pad,
        transcendentals=m_pad * v_pad,
        bytes_accessed=m_pad * v_pad * 4 + m_pad * 8,
    )

    return pl.pallas_call(
        kernel,
        out_shape=jax.ShapeDtypeStruct((m_pad, 1), jnp.float32),
        grid=grid,
        in_specs=[
            pl.BlockSpec((tm, tv), lambda i, j: (i, j)),
            pl.BlockSpec((tm, 1), lambda i, j: (i, 0)),
        ],
        out_specs=pl.BlockSpec((tm, 1), lambda i, j: (i, 0)),
        scratch_shapes=[pltpu.VMEM((tm, 1), jnp.float32)] * 3,
        compiler_params=pltpu.CompilerParams(
            dimension_semantics=("parallel", "arbitrary"),
            vmem_limit_bytes=48 * 1024 * 1024,
        ),
        cost_estimate=cost,
    )(logits_p, lab)


# ----------------------------------------------------------------------------
# Model
# ----------------------------------------------------------------------------
def init_params(key, vocab_size, n_embd, n_layer, k=6.11):
    hidden = int(n_embd * k)
    dims = ([(n_embd, hidden)] + [(hidden, hidden)] * (n_layer - 2)
            + [(hidden, n_embd)])
    params = {}
    key, sub = jax.random.split(key)
    params["emb"] = (jax.random.normal(sub, (vocab_size, n_embd), jnp.float32)
                     * 0.02).astype(jnp.bfloat16)
    params["ffnn"] = []
    for (din, dout) in dims:
        key, kw, kb = jax.random.split(key, 3)
        bound = 1.0 / jnp.sqrt(din)
        w = jax.random.uniform(kw, (din, dout), jnp.float32, -bound, bound)
        b = jax.random.uniform(kb, (dout,), jnp.float32, -bound, bound)
        params["ffnn"].append((w.astype(jnp.bfloat16), b))
    key, kw, kb = jax.random.split(key, 3)
    bound = 1.0 / jnp.sqrt(n_embd)
    params["out_w"] = jax.random.uniform(
        kw, (n_embd, vocab_size), jnp.float32, -bound, bound).astype(jnp.bfloat16)
    params["out_b"] = jax.random.uniform(kb, (vocab_size,), jnp.float32,
                                         -bound, bound)
    return params


def ffnn_lm_forward(params, input_ids, labels=None):
    B, T = input_ids.shape
    V = params["out_w"].shape[1]
    M = B * T

    # Embedding lookup (glue) + dropout (identity in eval mode).
    h = jnp.take(params["emb"], input_ids.reshape(-1), axis=0)   # (B*T, E) bf16

    # FFNN stack: Linear + ReLU (+ Dropout, identity) per layer — Pallas.
    # Activations stay bf16 and carry their zero padding between layers.
    for (w, b) in params["ffnn"]:
        h = dense(h, w, b, apply_relu=True, out_dtype=jnp.bfloat16)

    # Output projection (no ReLU) — Pallas, f32 logits (padded to lane tiles).
    logits_p = dense(h, params["out_w"], params["out_b"],
                     apply_relu=False, out_dtype=jnp.float32)

    logits = logits_p[:M, :V].reshape(B, T, V)
    outputs = {"logits": logits}

    if labels is not None:
        # Next-token shift via shifted labels + per-row weights: row (b, t)
        # predicts labels[b, t+1]; the last position of every sequence gets
        # weight 0.  No slice/copy of the big logits tensor.
        shifted = jnp.concatenate(
            [labels[:, 1:], jnp.zeros((B, 1), labels.dtype)], axis=1
        ).reshape(-1).astype(jnp.int32)                           # (B*T,)
        weights = jnp.concatenate(
            [jnp.ones((B, T - 1), jnp.float32), jnp.zeros((B, 1), jnp.float32)],
            axis=1).reshape(-1)                                   # (B*T,)

        m_rows = logits_p.shape[0]
        if m_rows > M:
            shifted = jnp.pad(shifted, (0, m_rows - M))
        per_row = cross_entropy_per_row(logits_p, shifted, v_valid=V)
        outputs["loss"] = (jnp.sum(per_row[:M, 0] * weights)
                           / jnp.sum(weights))
    return outputs


# ----------------------------------------------------------------------------
# Pure-JAX reference (mirrors the bf16 compute path) for correctness checking.
# ----------------------------------------------------------------------------
def _reference(params, input_ids, labels):
    B, T = input_ids.shape
    h = jnp.take(params["emb"], input_ids.reshape(-1), axis=0)
    for (w, b) in params["ffnn"]:
        y = jnp.dot(h, w, preferred_element_type=jnp.float32) + b
        h = jnp.maximum(y, 0.0).astype(jnp.bfloat16)
    logits = (jnp.dot(h, params["out_w"], preferred_element_type=jnp.float32)
              + params["out_b"])
    V = logits.shape[-1]
    logits = logits.reshape(B, T, V)
    sl = logits[:, :-1, :].reshape(-1, V)
    lb = labels[:, 1:].reshape(-1)
    lse = jax.scipy.special.logsumexp(sl, axis=-1)
    loss = jnp.mean(lse - sl[jnp.arange(sl.shape[0]), lb])
    return logits, loss


if __name__ == "__main__":
    # Small config consistent with the module.
    vocab_size, n_positions, n_embd, n_layer = 64, 16, 32, 3
    B, T = 2, 8

    key = jax.random.PRNGKey(0)
    kp, ki, kl = jax.random.split(key, 3)
    params = init_params(kp, vocab_size, n_embd, n_layer)
    input_ids = jax.random.randint(ki, (B, T), 0, vocab_size, dtype=jnp.int32)
    labels = jax.random.randint(kl, (B, T), 0, vocab_size, dtype=jnp.int32)

    out = ffnn_lm_forward(params, input_ids, labels=labels)
    logits = jax.block_until_ready(out["logits"])
    loss = jax.block_until_ready(out["loss"])

    ref_logits, ref_loss = _reference(params, input_ids, labels)
    assert jnp.allclose(logits, ref_logits, rtol=1e-2, atol=1e-2), "logits mismatch"
    assert jnp.allclose(loss, ref_loss, rtol=1e-2, atol=1e-2), "loss mismatch"

    print("KERNEL_OK")
</pallas_src>

<mosaic_0001>
module attributes {stable_mosaic.version = 11 : i64} {
  func.func @_dense_kernel(%arg0: i32, %arg1: i32, %arg2: i32, %arg3: memref<16x128xbf16, #tpu.memory_space<vmem>>, %arg4: memref<128x256xbf16, #tpu.memory_space<vmem>>, %arg5: memref<1x256xf32, #tpu.memory_space<vmem>>, %arg6: memref<16x256xbf16, #tpu.memory_space<vmem>>, %arg7: memref<16x256xf32, #tpu.memory_space<vmem>>) attributes {dimension_semantics = [#tpu.dimension_semantics<parallel>, #tpu.dimension_semantics<parallel>, #tpu.dimension_semantics<arbitrary>], iteration_bounds = array<i64: 1, 1, 1>, scalar_prefetch = 0 : i64, scratch_operands = 1 : i64, tpu.core_type = #tpu.core_type<tc>, window_params = [{transform_indices = @transform_0, window_bounds = array<i64: 16, 128>}, {transform_indices = @transform_1, window_bounds = array<i64: 128, 256>}, {transform_indices = @transform_2, window_bounds = array<i64: 1, 256>}, {transform_indices = @transform_3, window_bounds = array<i64: 16, 256>}]} {
    %c0_i32 = arith.constant 0 : i32
    %0 = arith.cmpi eq, %arg2, %c0_i32 : i32
    %1 = arith.extui %0 : i1 to i32
    %c0_i32_0 = arith.constant 0 : i32
    %2 = arith.cmpi ne, %1, %c0_i32_0 : i32
    scf.if %2 {
      %cst_10 = arith.constant 0.000000e+00 : f32
      %12 = vector.broadcast %cst_10 : f32 to vector<16x256xf32>
      %c0_11 = arith.constant 0 : index
      %c0_12 = arith.constant 0 : index
      %13 = vector.load %arg7[%c0_11, %c0_12] : memref<16x256xf32, #tpu.memory_space<vmem>>, vector<16x256xf32>
      tpu.vector_store %arg7[%c0_11, %c0_12], %12 {strides = array<i32>} : memref<16x256xf32, #tpu.memory_space<vmem>>, vector<16x256xf32>,
    } else {
    }
    %c0 = arith.constant 0 : index
    %c0_1 = arith.constant 0 : index
    %3 = vector.load %arg7[%c0, %c0_1] : memref<16x256xf32, #tpu.memory_space<vmem>>, vector<16x256xf32>
    %c0_2 = arith.constant 0 : index
    %c0_3 = arith.constant 0 : index
    %4 = vector.load %arg3[%c0_2, %c0_3] : memref<16x128xbf16, #tpu.memory_space<vmem>>, vector<16x128xbf16>
    %c0_4 = arith.constant 0 : index
    %c0_5 = arith.constant 0 : index
    %5 = vector.load %arg4[%c0_4, %c0_5] : memref<128x256xbf16, #tpu.memory_space<vmem>>, vector<128x256xbf16>
    %cst = arith.constant dense<0.000000e+00> : vector<16x256xf32>
    %6 = tpu.matmul %4, %5, %cst {dimension_numbers = #tpu.dot_dimension_numbers<[1], [0], [0], [1], [0, 0, 1, 1], [], []>} : vector<16x128xbf16>, vector<128x256xbf16>, vector<16x256xf32> -> vector<16x256xf32>
    %7 = arith.addf %3, %6 : vector<16x256xf32>
    %c0_6 = arith.constant 0 : index
    %c0_7 = arith.constant 0 : index
    %8 = vector.load %arg7[%c0_6, %c0_7] : memref<16x256xf32, #tpu.memory_space<vmem>>, vector<16x256xf32>
    tpu.vector_store %arg7[%c0_6, %c0_7], %7 {strides = array<i32>} : memref<16x256xf32, #tpu.memory_space<vmem>>, vector<16x256xf32>,
    %c0_i32_8 = arith.constant 0 : i32
    %9 = arith.cmpi eq, %arg2, %c0_i32_8 : i32
    %10 = arith.extui %9 : i1 to i32
    %c0_i32_9 = arith.constant 0 : i32
    %11 = arith.cmpi ne, %10, %c0_i32_9 : i32
    scf.if %11 {
      %c0_10 = arith.constant 0 : index
      %c0_11 = arith.constant 0 : index
      %12 = vector.load %arg7[%c0_10, %c0_11] : memref<16x256xf32, #tpu.memory_space<vmem>>, vector<16x256xf32>
      %c0_12 = arith.constant 0 : index
      %c0_13 = arith.constant 0 : index
      %13 = vector.load %arg5[%c0_12, %c0_13] : memref<1x256xf32, #tpu.memory_space<vmem>>, vector<1x256xf32>
      %14 = vector.broadcast %13 : vector<1x256xf32> to vector<16x256xf32>
      %15 = arith.addf %12, %14 : vector<16x256xf32>
      %cst_14 = arith.constant 0.000000e+00 : f32
      %16 = vector.broadcast %cst_14 : f32 to vector<16x256xf32>
      %17 = arith.maximumf %15, %16 : vector<16x256xf32>
      %18 = arith.truncf %17 : vector<16x256xf32> to vector<16x256xbf16>
      %c0_15 = arith.constant 0 : index
      %c0_16 = arith.constant 0 : index
      %19 = vector.load %arg6[%c0_15, %c0_16] : memref<16x256xbf16, #tpu.memory_space<vmem>>, vector<16x256xbf16>
      tpu.vector_store %arg6[%c0_15, %c0_16], %18 {strides = array<i32>} : memref<16x256xbf16, #tpu.memory_space<vmem>>, vector<16x256xbf16>,
    } else {
    }
    return
  }
  func.func @transform_0(%arg0: i32, %arg1: i32, %arg2: i32) -> (i32, i32) {
    %c0_i32 = arith.constant 0 : i32
    return %arg0, %arg2 : i32, i32
  }
  func.func @transform_1(%arg0: i32, %arg1: i32, %arg2: i32) -> (i32, i32) {
    %c0_i32 = arith.constant 0 : i32
    return %arg2, %arg1 : i32, i32
  }
  func.func @transform_2(%arg0: i32, %arg1: i32, %arg2: i32) -> (i32, i32) {
    %c0_i32 = arith.constant 0 : i32
    %c0_i32_0 = arith.constant 0 : i32
    return %c0_i32, %arg1 : i32, i32
  }
  func.func @transform_3(%arg0: i32, %arg1: i32, %arg2: i32) -> (i32, i32) {
    %c0_i32 = arith.constant 0 : i32
    return %arg0, %arg1 : i32, i32
  }
}

</mosaic_0001>

<bundles_post_ra>
// kernel: tpu_custom_call.1
= control target key start
LH: loop header
LB: loop body
LE: loop exit
PB: predicated region body
PF: predicated region fallthrough
CT: control target
= control target key end

     0   :  { %8 = vsyncpa [#allocation4], 0  ;;  %s436_s0 = inlined_call_operand.hbm [shape: bf16[16,128], index: 0, kind: input, shape index: {}]   ;;  %s437_s1 = inlined_call_operand.hbm [shape: bf16[128,256], index: 1, kind: input, shape index: {}]   ;;  %s438_s2 = inlined_call_operand.vmem [shape: f32[1,256], index: 2, kind: input, shape index: {}]   ;;  %s439_s3 = inlined_call_operand.hbm [shape: bf16[16,256], index: 3, kind: output, shape index: {}]  }
   0x1   :  { %9 = vsyncpa [#allocation7], 0 }
   0x2   :  { %10 = vsyncpa [#allocation5], 0  ;;  %s390_s12 = smov [#allocation3]  }
   0x3   :  { %s16_s13 = sshll.u32 %s390_s12, 4  ;;  %s17_s13 = int_to_ptr.vmem [resolvable:$true] %s16_s13 }
   0x4   :  { %s332_s14 = scalar_lea.vmem %s17_s13, 128  ;;  %p337_p1 = scmp.lt.s32.totalorder %s17_s13, %s17_s13 }
   0x5   :  { %p333_p0 = scmp.ne.s32.totalorder %s17_s13, %s332_s14  ;;  %p338_p2 = scmp.lt.s32.totalorder %s332_s14, %s332_s14 }
   0x7   :  { %p339_p3 = por %p338_p2, %p337_p1 }
   0x9   :  { %p340_p4 = pnand %p339_p3, %p333_p0 }
   0xb   :  { %343 = shalt.err (!%p340_p4)
}
   0xc   :  { %s391_s15 = smov 64   ;;  %s392_s16 = smov 4  }
   0xd   :  { %22 = dma.hbm_to_vmem [thread:$0]  %s436_s0, 128, %s17_s13, [#allocation4], %s391_s15, %s391_s15, %s392_s16  }
   0xe   :  { %s393_s19 = smov [#allocation6]  }
   0xf   :  { %s28_s20 = sshll.u32 %s393_s19, 4  ;;  %s29_s20 = int_to_ptr.vmem [resolvable:$true] %s28_s20 }
  0x10   :  { %s352_s21 = scalar_lea.vmem %s29_s20, 2048  ;;  %p357_p6 = scmp.lt.s32.totalorder %s29_s20, %s29_s20 }
  0x11   :  { %p353_p5 = scmp.ne.s32.totalorder %s29_s20, %s352_s21  ;;  %p358_p7 = scmp.lt.s32.totalorder %s352_s21, %s352_s21 }
  0x13   :  { %p359_p8 = por %p358_p7, %p357_p6 }
  0x15   :  { %p360_p9 = pnand %p359_p8, %p353_p5 }
  0x17   :  { %363 = shalt.err (!%p360_p9)
}
  0x18   :  { %s394_s22 = smov 128   ;;  %s395_s23 = smov 8  }
  0x19   :  { %34 = dma.hbm_to_vmem [thread:$0]  %s437_s1, 2048, %s29_s20, [#allocation7], %s394_s22, %s394_s22, %s395_s23  }
  0x1a   :  { %384 = dma.done.wait [#allocation4], 128  }
  0x1b   :  { %385 = vsyncadd [#allocation4], 4294967168 }
  0x1c   :  { %386 = dma.done.wait [#allocation7], 2048  }
  0x1d   :  { %387 = vsyncadd [#allocation7], 4294965248  ;;  %v396_v0 = vmov 0   ;;  %v299_v1 = vld [vmem:[#allocation6 + $0x74] ss:$8 sps:$4 sm:$0xff]   ;;  %v220_v18 = vlaneseq  ;;  %s397_s26 = smov [#allocation8]  }
  0x1e   :  { %192 = vmatprep.mubr.bf16.mxu0 %v396_v0  ;;  %v301_v2 = vld [vmem:[#allocation6 + $0x70] ss:$8 sps:$4 sm:$0xff]   ;;  %160 = vmatprep.subr.bf16.mxu0 %v299_v1  ;;  %v302_v3 = vld [vmem:[#allocation6 + $0x64] ss:$8 sps:$4 sm:$0xff]   ;;  %v304_v4 = vld [vmem:[#allocation6 + $0x60] ss:$8 sps:$4 sm:$0xff]  }
  0x1f   :  { %161 = vmatpush1.bf16.msra.mxu0 %v301_v2  ;;  %v305_v5 = vld [vmem:[#allocation6 + $0x54] ss:$8 sps:$4 sm:$0xff]   ;;  %v307_v6 = vld [vmem:[#allocation6 + $0x50] ss:$8 sps:$4 sm:$0xff]   ;;  %v308_v7 = vld [vmem:[#allocation6 + $0x44] ss:$8 sps:$4 sm:$0xff]  }
  0x20   :  { %162 = vmatprep.subr.bf16.mxu0 %v302_v3  ;;  %v310_v8 = vld [vmem:[#allocation6 + $0x40] ss:$8 sps:$4 sm:$0xff]   ;;  %v311_v9 = vld [vmem:[#allocation6 + $0x34] ss:$8 sps:$4 sm:$0xff]   ;;  %v313_v10 = vld [vmem:[#allocation6 + $0x30] ss:$8 sps:$4 sm:$0xff]  }
  0x21   :  { %v314_v11 = vld [vmem:[#allocation6 + $0x24] ss:$8 sps:$4 sm:$0xff]   ;;  %v316_v12 = vld [vmem:[#allocation6 + $0x20] ss:$8 sps:$4 sm:$0xff]   ;;  %v317_v13 = vld [vmem:[#allocation6 + $0x14] ss:$8 sps:$4 sm:$0xff]  }
  0x22   :  { %v319_v14 = vld [vmem:[#allocation6 + $0x10] ss:$8 sps:$4 sm:$0xff]   ;;  %v320_v15 = vld [vmem:[#allocation6 + $0x4] ss:$8 sps:$4 sm:$0xff]   ;;  %v322_v16 = vld [vmem:[#allocation6] ss:$8 sps:$4 sm:$0xff]  }
  0x23   :  { %163 = vmatpush1.bf16.msra.mxu0 %v304_v4  ;;  %v323_v17 = vld [vmem:[#allocation3] sm:$0xff]   ;;  %v221_v19 = vshrl.u32 %v220_v18, 7  ;;  %s257_s27 = sshll.u32 %s397_s26, 4  ;;  %s258_s27 = int_to_ptr.vmem [resolvable:$true] %s257_s27 }
  0x24   :  { %164 = vmatprep.subr.bf16.mxu0 %v305_v5  ;;  %v218_v21 = vld [vmem:[%s438_s2] sm:$0x3]  ;;  %s364_s2 = scalar_lea.vmem %s258_s27, 256  ;;  %p369_p11 = scmp.lt.s32.totalorder %s258_s27, %s258_s27 }
  0x25   :  { %v222_v20 = vsub.s32 0, %v221_v19  ;;  %v226_v22 = vsub.s32 1, %v221_v19  ;;  %p365_p10 = scmp.ne.s32.totalorder %s258_s27, %s364_s2  ;;  %p370_p12 = scmp.lt.s32.totalorder %s364_s2, %s364_s2 }
  0x27   :  { %165 = vmatpush1.bf16.msra.mxu0 %v307_v6  ;;  %v223_v23 = vrot.slane %v218_v21, %v222_v20  ;;  %v227_v24 = vrot.slane %v218_v21, %v226_v22  ;;  %p371_p13 = por %p370_p12, %p369_p11 }
  0x28   :  { %166 = vmatprep.subr.bf16.mxu0 %v308_v7 }
  0x29   :  { %p372_p0 = pnand %p371_p13, %p365_p10 }
  0x2b   :  { %167 = vmatpush1.bf16.msra.mxu0 %v310_v8 }
  0x2c   :  { %168 = vmatprep.subr.bf16.mxu0 %v311_v9 }
  0x2f   :  { %169 = vmatpush1.bf16.msra.mxu0 %v313_v10 }
  0x30   :  { %170 = vmatprep.subr.bf16.mxu0 %v314_v11 }
  0x33   :  { %171 = vmatpush1.bf16.msra.mxu0 %v316_v12 }
  0x34   :  { %172 = vmatprep.subr.bf16.mxu0 %v317_v13 }
  0x37   :  { %173 = vmatpush1.bf16.msra.mxu0 %v319_v14 }
  0x38   :  { %174 = vmatprep.subr.bf16.mxu0 %v320_v15 }
  0x3b   :  { %175 = vmatpush1.bf16.msra.mxu0 %v322_v16 }
  0x3e   :  { %193 = vmatmul.mubr.bf16.vlgmr.msra.gmra.mxu0 %v323_v17 }
  0xfe   :  { %v194_v25 = vpop.f32.mrf.mxu0 }
  0xff   :  { %v230_v26 = vadd.f32 %v223_v23, %v194_v25 }
 0x100   :  { %v196_v27 = vpop.f32.mrf.mxu0 }
 0x101   :  { %v231_v28 = vadd.f32 %v227_v24, %v196_v27  ;;  %v234_v30 = vmax.f32 %v230_v26, 0.0 }
 0x102   :  { %v198_v29 = vpop.f32.mrf.mxu0 }
 0x103   :  { %v235_v31 = vmax.f32 %v231_v28, 0.0  ;;  %v232_v32 = vadd.f32 %v223_v23, %v198_v29 }
 0x104   :  { %v200_v33 = vpop.f32.mrf.mxu0 }
 0x105   :  { %v289_v34 = vpack.c.bf16 %v235_v31, %v234_v30  ;;  %v233_v35 = vadd.f32 %v227_v24, %v200_v33  ;;  %v236_v36 = vmax.f32 %v232_v32, 0.0 }
 0x107   :  { %250 = vst [vmem:[#allocation8] sm:$0xff] %v289_v34  ;;  %v237_v37 = vmax.f32 %v233_v35, 0.0 }
 0x109   :  { %v290_v38 = vpack.c.bf16 %v237_v37, %v236_v36 }
 0x10b   :  { %251 = vst [vmem:[#allocation8 + $0x8] sm:$0xff] %v290_v38 }
 0x10c   :  { %375 = shalt.err (!%p372_p0)
}
 0x10d   :  { %263 = dma.vmem_to_hbm [thread:$0]  %s258_s27, 256, %s439_s3, [#allocation5], %s394_s22, %s394_s22, %s395_s23  }
 0x10e   :  { %388 = dma.done.wait [#allocation5], 256  }
 0x10f   :  { %389 = vsyncadd [#allocation5], 4294967040 }
 0x110   :  { %267 = vsyncpa [#allocation4], 1 }
 0x111   :  { %268 = vsyncpa [#allocation7], 1 }
 0x112   :  { %269 = vsyncpa [#allocation5], 1 }

</bundles_post_ra>
